<compile_context>
chip_gen: v5e
topology: v5e:2x2
jax: 0.10.0
libtpu: 0.0.40
codegen_flags: <defaults>
</compile_context>

<pallas_src>
import jax
import jax.numpy as jnp
from jax.experimental import pallas as pl
from jax.experimental.pallas import tpu as pltpu


def _round_up(x, m):
    return (x + m - 1) // m * m


def _vmem_budget():
    # v5e/v6e have 128 MiB VMEM -> bigger vocab tiles; v7x has 64 MiB.
    try:
        cap = pltpu.get_tpu_info().vmem_capacity_bytes
    except Exception:  # unknown / query unavailable -> conservative defaults
        cap = 64 * 1024 * 1024
    if cap >= 96 * 1024 * 1024:
        return 8192, 96 * 1024 * 1024
    return 4096, 48 * 1024 * 1024


def splade_kernel(h_ref, w_ref, b_ref, m_ref, o_ref, acc_ref):
    # h_ref:   (TB, TS, H)  bf16 hidden chunk
    # w_ref:   (H, TV)      bf16 vocab-projection tile (resident across b, s)
    # b_ref:   (1, TV)      f32 bias tile (resident across b, s)
    # m_ref:   (TB, TS, 1)  f32 attention mask chunk, strictly {0, 1}
    # o_ref:   (TB, TV)     f32 SPLADE pooled output tile (resident across s)
    # acc_ref: (TB, TV)     f32 running max of (h @ W + negmask); no bias yet
    s_idx = pl.program_id(2)

    @pl.when(s_idx == 0)
    def _():
        acc_ref[...] = jnp.full(acc_ref.shape, -jnp.inf, acc_ref.dtype)

    tb, ts, h_dim = h_ref.shape
    tv = o_ref.shape[-1]

    # Tall-M (M = TB*TS, multiple of 256) matmul with f32 accumulation.
    # TS is a multiple of 32, so both reshapes are pure views.
    h2d = h_ref[...].reshape(tb * ts, h_dim)
    logits = jnp.dot(h2d, w_ref[...], preferred_element_type=jnp.float32)

    # Additive mask: 0 for valid tokens, -1e30 for masked/padded tokens.
    # Single VPU broadcast-add pass over the (M, TV) block + one XLU sublane
    # max-reduce; bias/relu/log1p are deferred to the finalize step.
    neg = (m_ref[...] - 1.0) * 1e30                       # (TB, TS, 1)
    y = logits.reshape(tb, ts, tv) + neg                  # lane-broadcast add
    acc_ref[...] = jnp.maximum(acc_ref[...], jnp.max(y, axis=1))

    @pl.when(s_idx == pl.num_programs(2) - 1)
    def _():
        # Exact rewrite of  max_s( log1p(relu(h@W + bias)) * mask ):
        #   * bias is s-independent   -> commutes with max over s
        #   * relu == clamp at 0      -> one clamp after the max
        #   * log1p monotone on [0,∞) -> applied once per output element
        #   * masked rows carry -1e30 -> never win the max; all-masked -> 0
        pooled = jnp.maximum(acc_ref[...] + b_ref[...], 0.0)
        o_ref[...] = jnp.log1p(pooled)


def splade_pool(hidden, w_vocab, b_vocab, attention_mask, *,
                max_tile_v=None, max_tile_s=64):
    """Fused vocab projection + SPLADE max pooling.

    hidden:         (B, S, H) float32
    w_vocab:        (H, V)    float32
    b_vocab:        (V,)      float32
    attention_mask: (B, S)    float/int, strictly {0, 1}
    returns:        (B, V)    float32
    """
    B, S, H = hidden.shape
    V = w_vocab.shape[1]

    default_tile_v, vmem_limit = _vmem_budget()
    if max_tile_v is None:
        max_tile_v = default_tile_v

    # Batch block fixed at 8 (sublane multiple); seq chunk a multiple of 32 so
    # M = tile_b * tile_s is a multiple of 256 (MXU-aligned) and all in-kernel
    # reshapes are views.  Vocab tile: large multiple of 128 (lane-dense
    # stores, big DMAs), per-generation cap.
    tile_b = 8
    max_tile_s = max(32, _round_up(max_tile_s, 32))
    tile_s = min(max_tile_s, _round_up(S, 32))
    tile_v = min(_round_up(max_tile_v, 128), _round_up(V, 128))

    b_pad = _round_up(B, tile_b)
    s_pad = _round_up(S, tile_s)
    v_pad = _round_up(V, tile_v)

    # bf16 for the HBM-dominant matmul operands; f32 accumulate on the MXU.
    h_bf16 = hidden.astype(jnp.bfloat16)
    w_bf16 = w_vocab.astype(jnp.bfloat16)
    bias = b_vocab.astype(jnp.float32)
    mask = attention_mask.astype(jnp.float32)

    if (b_pad, s_pad) != (B, S):
        h_bf16 = jnp.pad(h_bf16, ((0, b_pad - B), (0, s_pad - S), (0, 0)))
        mask = jnp.pad(mask, ((0, b_pad - B), (0, s_pad - S)))  # pad == masked
    if v_pad != V:
        w_bf16 = jnp.pad(w_bf16, ((0, 0), (0, v_pad - V)))
        bias = jnp.pad(bias, (0, v_pad - V))
    bias2d = bias.reshape(1, v_pad)
    mask3d = mask.reshape(b_pad, s_pad, 1)   # trailing 1 keeps last dim = full

    n_vt = v_pad // tile_v
    n_bt = b_pad // tile_b
    n_st = s_pad // tile_s
    # vocab OUTER (W tile stays resident across both inner axes), batch middle,
    # seq-chunk INNERMOST (running-max reduction into the scratch accumulator).
    grid = (n_vt, n_bt, n_st)

    cost = pl.CostEstimate(
        flops=int(2 * b_pad * s_pad * H * v_pad),
        transcendentals=int(b_pad * v_pad),
        bytes_accessed=int(h_bf16.size * 2 * n_vt + w_bf16.size * 2
                           + bias2d.size * 4 + mask3d.size * 4 * n_vt
                           + b_pad * v_pad * 4))

    out = pl.pallas_call(
        splade_kernel,
        out_shape=jax.ShapeDtypeStruct((b_pad, v_pad), jnp.float32),
        grid_spec=pltpu.PrefetchScalarGridSpec(
            num_scalar_prefetch=0,
            grid=grid,
            in_specs=[
                pl.BlockSpec((tile_b, tile_s, H), lambda j, b, s: (b, s, 0)),
                pl.BlockSpec((H, tile_v), lambda j, b, s: (0, j)),
                pl.BlockSpec((1, tile_v), lambda j, b, s: (0, j)),
                pl.BlockSpec((tile_b, tile_s, 1), lambda j, b, s: (b, s, 0)),
            ],
            out_specs=pl.BlockSpec((tile_b, tile_v), lambda j, b, s: (b, j)),
            scratch_shapes=[pltpu.VMEM((tile_b, tile_v), jnp.float32)],
        ),
        compiler_params=pltpu.CompilerParams(
            # Megacore split on the vocab axis only (protects W residency);
            # batch is independent but kept sequential; seq is a reduction.
            dimension_semantics=("parallel", "arbitrary", "arbitrary"),
            vmem_limit_bytes=vmem_limit),
        cost_estimate=cost,
    )(h_bf16, w_bf16, bias2d, mask3d)

    return out[:B, :V]


if __name__ == "__main__":
    key = jax.random.PRNGKey(0)
    # S and V deliberately NOT multiples of the tiles (exercise padding); the
    # small tile caps below force a (2 vocab x 1 batch x 3 seq-chunk) grid so
    # the running-max accumulator path is actually exercised.
    B, S, H, V = 2, 80, 32, 500
    k1, k2, k3, k4, k5, k6 = jax.random.split(key, 6)

    # Deterministic synthetic "MLM" parameters (see TODO(synk) at top).
    emb = jax.random.normal(k1, (V, H), jnp.float32) * 0.02       # token embeddings
    w_t = jax.random.normal(k2, (H, H), jnp.float32) * 0.05       # head transform
    b_t = jax.random.normal(k3, (H,), jnp.float32) * 0.01
    w_vocab = jax.random.normal(k4, (H, V), jnp.float32) * 0.05   # vocab projection
    b_vocab = jax.random.normal(k5, (V,), jnp.float32) * 0.01

    # Inputs (the kwargs the PyTorch module receives).
    input_ids = jax.random.randint(k6, (B, S), 0, V)
    lens = jnp.array([S, S // 2 + 1])
    attention_mask = (jnp.arange(S)[None, :] < lens[:, None]).astype(jnp.float32)

    # Encoder glue in plain JAX: embedding lookup + dense/gelu/layernorm head.
    hidden = emb[input_ids]                                        # (B, S, H)
    hidden = jax.nn.gelu(hidden @ w_t + b_t)
    hidden = (hidden - hidden.mean(-1, keepdims=True)) / jnp.sqrt(
        hidden.var(-1, keepdims=True) + 1e-12)

    # Hot path in Pallas: vocab matmul + mask + max over seq + bias/relu/log1p.
    out = splade_pool(hidden, w_vocab, b_vocab, attention_mask,
                      max_tile_v=256, max_tile_s=32)
    out = jax.block_until_ready(out)
    assert out.shape == (B, V)

    # Reference matched to the kernel's bf16 matmul inputs (tight check).
    logits_bf = jnp.dot(hidden.astype(jnp.bfloat16).reshape(B * S, H),
                        w_vocab.astype(jnp.bfloat16),
                        preferred_element_type=jnp.float32).reshape(B, S, V)
    logits_bf = logits_bf + b_vocab
    ref_bf = jnp.max(jnp.log1p(jax.nn.relu(logits_bf)) * attention_mask[..., None],
                     axis=1)
    assert jnp.allclose(out, ref_bf, atol=1e-4, rtol=1e-4), "mismatch vs bf16 reference"

    # Full-precision reference for the exact PyTorch forward semantics
    # (looser tolerance documents the bf16 weight/activation cast).
    logits_f32 = hidden @ w_vocab + b_vocab
    ref_f32 = jnp.max(jnp.log1p(jax.nn.relu(logits_f32)) * attention_mask[..., None],
                      axis=1)
    assert jnp.allclose(out, ref_f32, atol=5e-2), "mismatch vs f32 reference"

    print("KERNEL_OK")
</pallas_src>

<mosaic_0001>
module attributes {stable_mosaic.version = 11 : i64} {
  func.func @splade_kernel(%arg0: i32, %arg1: i32, %arg2: i32, %arg3: memref<8x32x32xbf16, #tpu.memory_space<vmem>>, %arg4: memref<32x256xbf16, #tpu.memory_space<vmem>>, %arg5: memref<1x256xf32, #tpu.memory_space<vmem>>, %arg6: memref<8x32x1xf32, #tpu.memory_space<vmem>>, %arg7: memref<8x256xf32, #tpu.memory_space<vmem>>, %arg8: memref<8x256xf32, #tpu.memory_space<vmem>>) attributes {dimension_semantics = [#tpu.dimension_semantics<parallel>, #tpu.dimension_semantics<arbitrary>, #tpu.dimension_semantics<arbitrary>], iteration_bounds = array<i64: 2, 1, 3>, scalar_prefetch = 0 : i64, scratch_operands = 1 : i64, tpu.core_type = #tpu.core_type<tc>, window_params = [{transform_indices = @transform_0, window_bounds = array<i64: 8, 32, 32>}, {transform_indices = @transform_1, window_bounds = array<i64: 32, 256>}, {transform_indices = @transform_2, window_bounds = array<i64: 1, 256>}, {transform_indices = @transform_3, window_bounds = array<i64: 8, 32, 1>}, {transform_indices = @transform_4, window_bounds = array<i64: 8, 256>}]} {
    %c0_i32 = arith.constant 0 : i32
    %0 = arith.cmpi eq, %arg2, %c0_i32 : i32
    %1 = arith.extui %0 : i1 to i32
    %c0_i32_0 = arith.constant 0 : i32
    %2 = arith.cmpi ne, %1, %c0_i32_0 : i32
    scf.if %2 {
      %cst_16 = arith.constant 0xFF800000 : f32
      %22 = vector.broadcast %cst_16 : f32 to vector<8x256xf32>
      %c0_17 = arith.constant 0 : index
      %c0_18 = arith.constant 0 : index
      %23 = vector.load %arg8[%c0_17, %c0_18] : memref<8x256xf32, #tpu.memory_space<vmem>>, vector<8x256xf32>
      tpu.vector_store %arg8[%c0_17, %c0_18], %22 {strides = array<i32>} : memref<8x256xf32, #tpu.memory_space<vmem>>, vector<8x256xf32>,
    } else {
    }
    %c0 = arith.constant 0 : index
    %c0_1 = arith.constant 0 : index
    %c0_2 = arith.constant 0 : index
    %3 = vector.load %arg3[%c0, %c0_1, %c0_2] : memref<8x32x32xbf16, #tpu.memory_space<vmem>>, vector<8x32x32xbf16>
    %4 = vector.shape_cast %3 : vector<8x32x32xbf16> to vector<256x32xbf16>
    %c0_3 = arith.constant 0 : index
    %c0_4 = arith.constant 0 : index
    %5 = vector.load %arg4[%c0_3, %c0_4] : memref<32x256xbf16, #tpu.memory_space<vmem>>, vector<32x256xbf16>
    %cst = arith.constant dense<0.000000e+00> : vector<256x256xf32>
    %6 = tpu.matmul %4, %5, %cst {dimension_numbers = #tpu.dot_dimension_numbers<[1], [0], [0], [1], [0, 0, 1, 1], [], []>} : vector<256x32xbf16>, vector<32x256xbf16>, vector<256x256xf32> -> vector<256x256xf32>
    %c0_5 = arith.constant 0 : index
    %c0_6 = arith.constant 0 : index
    %c0_7 = arith.constant 0 : index
    %7 = vector.load %arg6[%c0_5, %c0_6, %c0_7] : memref<8x32x1xf32, #tpu.memory_space<vmem>>, vector<8x32x1xf32>
    %cst_8 = arith.constant 1.000000e+00 : f32
    %8 = vector.broadcast %cst_8 : f32 to vector<8x32x1xf32>
    %9 = arith.subf %7, %8 : vector<8x32x1xf32>
    %cst_9 = arith.constant 1.000000e+30 : f32
    %10 = vector.broadcast %cst_9 : f32 to vector<8x32x1xf32>
    %11 = arith.mulf %9, %10 : vector<8x32x1xf32>
    %12 = vector.shape_cast %6 : vector<256x256xf32> to vector<8x32x256xf32>
    %13 = vector.broadcast %11 : vector<8x32x1xf32> to vector<8x32x256xf32>
    %14 = arith.addf %12, %13 : vector<8x32x256xf32>
    %c0_10 = arith.constant 0 : index
    %c0_11 = arith.constant 0 : index
    %15 = vector.load %arg8[%c0_10, %c0_11] : memref<8x256xf32, #tpu.memory_space<vmem>>, vector<8x256xf32>
    %cst_12 = arith.constant dense<0xFF800000> : vector<8x256xf32>
    %16 = vector.multi_reduction <maximumf>, %14, %cst_12 [1] : vector<8x32x256xf32> to vector<8x256xf32>
    %17 = arith.maximumf %15, %16 : vector<8x256xf32>
    %c0_13 = arith.constant 0 : index
    %c0_14 = arith.constant 0 : index
    %18 = vector.load %arg8[%c0_13, %c0_14] : memref<8x256xf32, #tpu.memory_space<vmem>>, vector<8x256xf32>
    tpu.vector_store %arg8[%c0_13, %c0_14], %17 {strides = array<i32>} : memref<8x256xf32, #tpu.memory_space<vmem>>, vector<8x256xf32>,
    %c2_i32 = arith.constant 2 : i32
    %19 = arith.cmpi eq, %arg2, %c2_i32 : i32
    %20 = arith.extui %19 : i1 to i32
    %c0_i32_15 = arith.constant 0 : i32
    %21 = arith.cmpi ne, %20, %c0_i32_15 : i32
    scf.if %21 {
      %c0_16 = arith.constant 0 : index
      %c0_17 = arith.constant 0 : index
      %22 = vector.load %arg8[%c0_16, %c0_17] : memref<8x256xf32, #tpu.memory_space<vmem>>, vector<8x256xf32>
      %c0_18 = arith.constant 0 : index
      %c0_19 = arith.constant 0 : index
      %23 = vector.load %arg5[%c0_18, %c0_19] : memref<1x256xf32, #tpu.memory_space<vmem>>, vector<1x256xf32>
      %24 = vector.broadcast %23 : vector<1x256xf32> to vector<8x256xf32>
      %25 = arith.addf %22, %24 : vector<8x256xf32>
      %cst_20 = arith.constant 0.000000e+00 : f32
      %26 = vector.broadcast %cst_20 : f32 to vector<8x256xf32>
      %27 = arith.maximumf %25, %26 : vector<8x256xf32>
      %28 = math.log1p %27 : vector<8x256xf32>
      %c0_21 = arith.constant 0 : index
      %c0_22 = arith.constant 0 : index
      %29 = vector.load %arg7[%c0_21, %c0_22] : memref<8x256xf32, #tpu.memory_space<vmem>>, vector<8x256xf32>
      tpu.vector_store %arg7[%c0_21, %c0_22], %28 {strides = array<i32>} : memref<8x256xf32, #tpu.memory_space<vmem>>, vector<8x256xf32>,
    } else {
    }
    return
  }
  func.func @transform_0(%arg0: i32, %arg1: i32, %arg2: i32) -> (i32, i32, i32) {
    %c0_i32 = arith.constant 0 : i32
    %c0_i32_0 = arith.constant 0 : i32
    return %arg1, %arg2, %c0_i32 : i32, i32, i32
  }
  func.func @transform_1(%arg0: i32, %arg1: i32, %arg2: i32) -> (i32, i32) {
    %c0_i32 = arith.constant 0 : i32
    %c0_i32_0 = arith.constant 0 : i32
    return %c0_i32, %arg0 : i32, i32
  }
  func.func @transform_2(%arg0: i32, %arg1: i32, %arg2: i32) -> (i32, i32) {
    %c0_i32 = arith.constant 0 : i32
    %c0_i32_0 = arith.constant 0 : i32
    return %c0_i32, %arg0 : i32, i32
  }
  func.func @transform_3(%arg0: i32, %arg1: i32, %arg2: i32) -> (i32, i32, i32) {
    %c0_i32 = arith.constant 0 : i32
    %c0_i32_0 = arith.constant 0 : i32
    return %arg1, %arg2, %c0_i32 : i32, i32, i32
  }
  func.func @transform_4(%arg0: i32, %arg1: i32, %arg2: i32) -> (i32, i32) {
    %c0_i32 = arith.constant 0 : i32
    return %arg1, %arg0 : i32, i32
  }
}

</mosaic_0001>

<bundles_post_ra>
// kernel: tpu_custom_call.1
= control target key start
LH: loop header
LB: loop body
LE: loop exit
PB: predicated region body
PF: predicated region fallthrough
CT: control target
= control target key end

     0   :  { %s2629_s0 = inlined_call_operand.vmem [shape: bf16[8,96,32], index: 0, kind: input, shape index: {}]   ;;  %s2630_s1 = inlined_call_operand.vmem [shape: bf16[32,512], index: 1, kind: input, shape index: {}]   ;;  %s2631_s2 = inlined_call_operand.vmem [shape: f32[1,512], index: 2, kind: input, shape index: {}]   ;;  %s2632_s3 = inlined_call_operand.vmem [shape: f32[8,96,1], index: 3, kind: input, shape index: {}]   ;;  %s2633_s4 = inlined_call_operand.hbm [shape: f32[8,512], index: 4, kind: output, shape index: {}]  }
   0x1   :  { %2634 = sst [smem:[#allocation9_spill]] %s2629_s0 }
   0x2   :  { %2635 = sst [smem:[#allocation10_spill]] %s2630_s1 }
   0x3   :  { %2636 = sst [smem:[#allocation11_spill]] %s2632_s3 }
   0x4   :  { %9 = vsyncpa [#allocation7], 0 }
   0x5   :  { %11 = vsyncpa [#allocation7 + $0x1], 0  ;;  %s2168_s15 = smov 0   ;;  %s2170_s16 = smov 0  }
   0x6   :  { %s2172_s17 = smov 0   ;;  %s2174_s18 = smov 0  }
   0x7   :  { %s2176_s19 = smov 0   ;;  %s2178_s20 = smov 0  }
   0x8   :  { %s2180_s21 = smov 0   ;;  %s2182_s22 = smov 0  }
   0x9   :  { %s2184_s23 = smov 0   ;;  %s2186_s24 = smov 0  }
   0xa LB: > { %s1735_s25 = sadd.s32 4294967295, %s2139_s24   ;;  %s1736_s26 = sadd.s32 4294967294, %s2139_s24   ;;  %s2139_s24 = sphi %s2186_s24, %s17_s24   ;;  %s2135_s23 = sphi %s2184_s23, %s2652_s23   ;;  %s2131_s22 = sphi %s2182_s22, %s2651_s22   ;;  %s2127_s21 = sphi %s2180_s21, %s2650_s21   ;;  %s2123_s20 = sphi %s2178_s20, %s2649_s20   ;;  %s2119_s19 = sphi %s2176_s19, %s2648_s19   ;;  %s2115_s18 = sphi %s2174_s18, %s2647_s18   ;;  %s2111_s17 = sphi %s2172_s17, %s2646_s17   ;;  %s2107_s16 = sphi %s2170_s16, %s2645_s16   ;;  %s2103_s15 = sphi %s2168_s15, %s2644_s15  }
   0xb   : > { %s29_s27 = sadd.s32 1, %s2131_s22  ;;  %s36_s28 = sadd.s32 1, %s2135_s23 }
   0xc   : > { %p30_p0 = scmp.ge.s32.totalorder %s29_s27, 3  ;;  %s45_s29 = sadd.s32 1, %s2119_s19 }
   0xd   : > { %p52_p1 = scmp.ne.s32.totalorder %s2119_s19, %s2115_s18  ;;  %p53_p2 = scmp.eq.s32.totalorder %s2139_s24, 0 }
   0xe   : > { %s2654_s27 = smov (%p30_p0, %s29_s27), 0  ;;  %s2656_s28 = smov (!%p30_p0, %s36_s28), %s2135_s23 }
   0xf   : > { %s41_s30 = ssub.s32 %s2131_s22, %s2654_s27  ;;  %p2231_p3 = por %p53_p2, %p52_p1 }
  0x10   : > { %p38_p4 = scmp.ge.s32.totalorder %s2656_s28, 2  ;;  %p43_p5 = scmp.eq.s32.totalorder %s41_s30, 0 }
  0x11   : > { %s71_s6 = sadd.s32 1, %s2111_s17  ;;  %p78_p6 = scmp.ne.s32.totalorder %s2111_s17, %s2107_s16 }
  0x12   : > { %s2658_s28 = smov (%p38_p4, %s2656_s28), 0  ;;  %p164_p9 = scmp.eq.s32.totalorder %s1735_s25, 5 }
  0x13   : > { %s2241_s7 = scalar_select %p43_p5, %s2119_s19, %s45_s29  }
  0x14   : > { %s68_s8 = ssub.s32 %s2135_s23, %s2658_s28  ;;  %p2245_p7 = por %p78_p6, %p53_p2 }
  0x15   : > { %p69_p8 = scmp.eq.s32.totalorder %s68_s8, 0  ;;  %p169_p10 = scmp.ne.s32.totalorder %s2107_s16, %s2103_s15 }
  0x16   : > { %p170_p11 = scmp.eq.s32.totalorder %s1736_s26, 5  ;;  %p2254_p12 = por %p164_p9, %p78_p6 }
  0x17   : > { %s2252_s10 = scalar_select %p69_p8, %s2111_s17, %s71_s6  }
  0x18   : > { %p2258_p13 = por %p170_p11, %p169_p10  ;;  %p1738_p0 = scmp.ge.s32.totalorder %s2139_s24, 6 }
  0x1a   : > { %186 = sbr.rel (%p1738_p0) target bundleno = 113 (0x71), region = 16 }
  0x1f   : > { %189 = sbr.rel (!%p2231_p3) target bundleno = 57 (0x39), region = 20  ;;  %s191_s13 = sand.u32 (%p2231_p3), 1, %s2119_s19  }
  0x20   : > { %s1905_s14 = sshll.u32 (%p2231_p3), %s2131_s22, 4  ;;  %s1739_s25 = sshll.u32 (%p2231_p3), %s191_s13, 7 }
  0x21   : > { %s2641_s0 = sld [smem:[#allocation9_spill]] (%p2231_p3)  ;;  %s193_s6 = scalar_lea.vmem (%p2231_p3), [#allocation3], %s1739_s25 }
  0x27   : > { %s2270_s30 = scalar_lea.vmem %s2641_s0, %s1905_s14 }
  0x28   : > { %v216_v0 = vld [vmem:[%s2270_s30] sm:$0xff]   ;;  %v220_v1 = vld [vmem:[%s2270_s30 + $0x8] sm:$0xff]   ;;  %v224_v2 = vld [vmem:[%s2270_s30 + $0x30] sm:$0xff]  }
  0x29   : > { %217 = vst [vmem:[%s193_s6] sm:$0xff] %v216_v0   ;;  %v228_v3 = vld [vmem:[%s2270_s30 + $0x38] sm:$0xff]   ;;  %v232_v4 = vld [vmem:[%s2270_s30 + $0x60] sm:$0xff]   ;;  %v236_v5 = vld [vmem:[%s2270_s30 + $0x68] sm:$0xff]  }
  0x2a   : > { %221 = vst [vmem:[%s193_s6 + $0x8] sm:$0xff] %v220_v1   ;;  %v240_v6 = vld [vmem:[%s2270_s30 + $0x90] sm:$0xff]   ;;  %v244_v7 = vld [vmem:[%s2270_s30 + $0x98] sm:$0xff]   ;;  %v248_v8 = vld [vmem:[%s2270_s30 + $0xc0] sm:$0xff]  }
  0x2b   : > { %225 = vst [vmem:[%s193_s6 + $0x10] sm:$0xff] %v224_v2   ;;  %v252_v9 = vld [vmem:[%s2270_s30 + $0xc8] sm:$0xff]   ;;  %v256_v10 = vld [vmem:[%s2270_s30 + $0xf0] sm:$0xff]   ;;  %v260_v11 = vld [vmem:[%s2270_s30 + $0xf8] sm:$0xff]  }
  0x2c   : > { %229 = vst [vmem:[%s193_s6 + $0x18] sm:$0xff] %v228_v3   ;;  %v264_v12 = vld [vmem:[%s2270_s30 + $0x120] sm:$0xff]   ;;  %v268_v13 = vld [vmem:[%s2270_s30 + $0x128] sm:$0xff]   ;;  %v272_v14 = vld [vmem:[%s2270_s30 + $0x150] sm:$0xff]  }
  0x2d   : > { %233 = vst [vmem:[%s193_s6 + $0x20] sm:$0xff] %v232_v4   ;;  %v276_v15 = vld [vmem:[%s2270_s30 + $0x158] sm:$0xff]  }
  0x2e   : > { %237 = vst [vmem:[%s193_s6 + $0x28] sm:$0xff] %v236_v5  }
  0x2f   : > { %241 = vst [vmem:[%s193_s6 + $0x30] sm:$0xff] %v240_v6  }
  0x30   : > { %245 = vst [vmem:[%s193_s6 + $0x38] sm:$0xff] %v244_v7  }
  0x31   : > { %249 = vst [vmem:[%s193_s6 + $0x40] sm:$0xff] %v248_v8  }
  0x32   : > { %253 = vst [vmem:[%s193_s6 + $0x48] sm:$0xff] %v252_v9  }
  0x33   : > { %257 = vst [vmem:[%s193_s6 + $0x50] sm:$0xff] %v256_v10  }
  0x34   : > { %261 = vst [vmem:[%s193_s6 + $0x58] sm:$0xff] %v260_v11  }
  0x35   : > { %265 = vst [vmem:[%s193_s6 + $0x60] sm:$0xff] %v264_v12  }
  0x36   : > { %269 = vst [vmem:[%s193_s6 + $0x68] sm:$0xff] %v268_v13  }
  0x37   : > { %273 = vst [vmem:[%s193_s6 + $0x70] sm:$0xff] %v272_v14  }
  0x38   : > { %277 = vst [vmem:[%s193_s6 + $0x78] sm:$0xff] %v276_v15  }
  0x39 PF: > { %367 = sbr.rel (!%p2245_p7) target bundleno = 71 (0x47), region = 61  ;;  %s369_s8 = sand.u32 (%p2245_p7), 1, %s2111_s17  }
  0x3a   : > { %s1906_s13 = sshll.u32 (%p2245_p7), %s2135_s23, 3  ;;  %s1742_s14 = sshll.u32 (%p2245_p7), %s369_s8, 5 }
  0x3b   : > { %s2642_s1 = sld [smem:[#allocation10_spill]] (%p2245_p7)  ;;  %s371_s30 = scalar_lea.vmem (%p2245_p7), [#allocation4], %s1742_s14 }
  0x41   : > { %s374_s29 = scalar_lea.vmem %s2642_s1, %s1906_s13 }
  0x42   : > { %v409_v16 = vld [vmem:[%s374_s29] sm:$0xff]  ;;  %v411_v17 = vld [vmem:[%s374_s29 + $0x10] sm:$0xff] }
  0x43   : > { %v413_v18 = vld [vmem:[%s374_s29 + $0x20] sm:$0xff]  ;;  %410 = vst [vmem:[%s371_s30] sm:$0xff] %v409_v16  ;;  %v415_v19 = vld [vmem:[%s374_s29 + $0x30] sm:$0xff] }
  0x44   : > { %412 = vst [vmem:[%s371_s30 + $0x8] sm:$0xff] %v411_v17 }
  0x45   : > { %414 = vst [vmem:[%s371_s30 + $0x10] sm:$0xff] %v413_v18 }
  0x46   : > { %416 = vst [vmem:[%s371_s30 + $0x18] sm:$0xff] %v415_v19 }
  0x47 PF: > { %430 = sbr.rel (!%p2231_p3) target bundleno = 113 (0x71), region = 103  ;;  %s432_s9 = sand.u32 (%p2231_p3), 1, %s2119_s19  }
  0x48   : > { %s1907_s6 = sshll.u32 (%p2231_p3), %s2131_s22, 5  ;;  %s1745_s8 = sshll.u32 (%p2231_p3), %s432_s9, 8 }
  0x49   : > { %s2643_s3 = sld [smem:[#allocation11_spill]] (%p2231_p3)  ;;  %s2307_s5 = scalar_lea.vmem (%p2231_p3), [#allocation5], %s1745_s8 }
  0x4f   : > { %s2302_s26 = scalar_lea.vmem %s2643_s3, %s1907_s6 }
  0x50   : > { %v531_v20 = vld [vmem:[%s2302_s26] sm:$0xff]  ;;  %v533_v21 = vld [vmem:[%s2302_s26 + $0x8] sm:$0xff]  ;;  %v535_v22 = vld [vmem:[%s2302_s26 + $0x10] sm:$0xff] }
  0x51   : > { %532 = vst [vmem:[%s2307_s5] sm:$0xff] %v531_v20  ;;  %v537_v23 = vld [vmem:[%s2302_s26 + $0x18] sm:$0xff]  ;;  %v539_v24 = vld [vmem:[%s2302_s26 + $0x60] sm:$0xff]  ;;  %v541_v25 = vld [vmem:[%s2302_s26 + $0x68] sm:$0xff] }
  0x52   : > { %534 = vst [vmem:[%s2307_s5 + $0x8] sm:$0xff] %v533_v21  ;;  %v543_v26 = vld [vmem:[%s2302_s26 + $0x70] sm:$0xff]  ;;  %v545_v27 = vld [vmem:[%s2302_s26 + $0x78] sm:$0xff]  ;;  %v547_v28 = vld [vmem:[%s2302_s26 + $0xc0] sm:$0xff] }
  0x53   : > { %536 = vst [vmem:[%s2307_s5 + $0x10] sm:$0xff] %v535_v22  ;;  %v549_v29 = vld [vmem:[%s2302_s26 + $0xc8] sm:$0xff]  ;;  %v551_v30 = vld [vmem:[%s2302_s26 + $0xd0] sm:$0xff]  ;;  %v553_v31 = vld [vmem:[%s2302_s26 + $0xd8] sm:$0xff] }
  0x54   : > { %538 = vst [vmem:[%s2307_s5 + $0x18] sm:$0xff] %v537_v23  ;;  %v555_v32 = vld [vmem:[%s2302_s26 + $0x120] sm:$0xff]  ;;  %v557_v33 = vld [vmem:[%s2302_s26 + $0x128] sm:$0xff]  ;;  %v559_v34 = vld [vmem:[%s2302_s26 + $0x130] sm:$0xff] }
  0x55   : > { %540 = vst [vmem:[%s2307_s5 + $0x20] sm:$0xff] %v539_v24  ;;  %v561_v35 = vld [vmem:[%s2302_s26 + $0x138] sm:$0xff]  ;;  %v563_v36 = vld [vmem:[%s2302_s26 + $0x180] sm:$0xff]  ;;  %v565_v37 = vld [vmem:[%s2302_s26 + $0x188] sm:$0xff] }
  0x56   : > { %542 = vst [vmem:[%s2307_s5 + $0x28] sm:$0xff] %v541_v25  ;;  %v567_v38 = vld [vmem:[%s2302_s26 + $0x190] sm:$0xff]  ;;  %v569_v39 = vld [vmem:[%s2302_s26 + $0x198] sm:$0xff]  ;;  %v571_v40 = vld [vmem:[%s2302_s26 + $0x1e0] sm:$0xff] }
  0x57   : > { %544 = vst [vmem:[%s2307_s5 + $0x30] sm:$0xff] %v543_v26  ;;  %v573_v41 = vld [vmem:[%s2302_s26 + $0x1e8] sm:$0xff]  ;;  %v575_v42 = vld [vmem:[%s2302_s26 + $0x1f0] sm:$0xff]  ;;  %v577_v43 = vld [vmem:[%s2302_s26 + $0x1f8] sm:$0xff] }
  0x58   : > { %546 = vst [vmem:[%s2307_s5 + $0x38] sm:$0xff] %v545_v27  ;;  %v579_v44 = vld [vmem:[%s2302_s26 + $0x240] sm:$0xff]  ;;  %v581_v45 = vld [vmem:[%s2302_s26 + $0x248] sm:$0xff]  ;;  %v583_v46 = vld [vmem:[%s2302_s26 + $0x250] sm:$0xff] }
  0x59   : > { %548 = vst [vmem:[%s2307_s5 + $0x40] sm:$0xff] %v547_v28  ;;  %v585_v47 = vld [vmem:[%s2302_s26 + $0x258] sm:$0xff]  ;;  %v587_v48 = vld [vmem:[%s2302_s26 + $0x2a0] sm:$0xff]  ;;  %v589_v49 = vld [vmem:[%s2302_s26 + $0x2a8] sm:$0xff] }
  0x5a   : > { %550 = vst [vmem:[%s2307_s5 + $0x48] sm:$0xff] %v549_v29  ;;  %v591_v50 = vld [vmem:[%s2302_s26 + $0x2b0] sm:$0xff]  ;;  %v593_v51 = vld [vmem:[%s2302_s26 + $0x2b8] sm:$0xff] }
  0x5b   : > { %552 = vst [vmem:[%s2307_s5 + $0x50] sm:$0xff] %v551_v30 }
  0x5c   : > { %554 = vst [vmem:[%s2307_s5 + $0x58] sm:$0xff] %v553_v31 }
  0x5d   : > { %556 = vst [vmem:[%s2307_s5 + $0x60] sm:$0xff] %v555_v32 }
  0x5e   : > { %558 = vst [vmem:[%s2307_s5 + $0x68] sm:$0xff] %v557_v33 }
  0x5f   : > { %560 = vst [vmem:[%s2307_s5 + $0x70] sm:$0xff] %v559_v34 }
  0x60   : > { %562 = vst [vmem:[%s2307_s5 + $0x78] sm:$0xff] %v561_v35 }
  0x61   : > { %564 = vst [vmem:[%s2307_s5 + $0x80] sm:$0xff] %v563_v36 }
  0x62   : > { %566 = vst [vmem:[%s2307_s5 + $0x88] sm:$0xff] %v565_v37 }
  0x63   : > { %568 = vst [vmem:[%s2307_s5 + $0x90] sm:$0xff] %v567_v38 }
  0x64   : > { %570 = vst [vmem:[%s2307_s5 + $0x98] sm:$0xff] %v569_v39 }
  0x65   : > { %572 = vst [vmem:[%s2307_s5 + $0xa0] sm:$0xff] %v571_v40 }
  0x66   : > { %574 = vst [vmem:[%s2307_s5 + $0xa8] sm:$0xff] %v573_v41 }
  0x67   : > { %576 = vst [vmem:[%s2307_s5 + $0xb0] sm:$0xff] %v575_v42 }
  0x68   : > { %578 = vst [vmem:[%s2307_s5 + $0xb8] sm:$0xff] %v577_v43 }
  0x69   : > { %580 = vst [vmem:[%s2307_s5 + $0xc0] sm:$0xff] %v579_v44 }
  0x6a   : > { %582 = vst [vmem:[%s2307_s5 + $0xc8] sm:$0xff] %v581_v45 }
  0x6b   : > { %584 = vst [vmem:[%s2307_s5 + $0xd0] sm:$0xff] %v583_v46 }
  0x6c   : > { %586 = vst [vmem:[%s2307_s5 + $0xd8] sm:$0xff] %v585_v47 }
  0x6d   : > { %588 = vst [vmem:[%s2307_s5 + $0xe0] sm:$0xff] %v587_v48 }
  0x6e   : > { %590 = vst [vmem:[%s2307_s5 + $0xe8] sm:$0xff] %v589_v49 }
  0x6f   : > { %592 = vst [vmem:[%s2307_s5 + $0xf0] sm:$0xff] %v591_v50 }
  0x70   : > { %594 = vst [vmem:[%s2307_s5 + $0xf8] sm:$0xff] %v593_v51 }
  0x71 PF: > { %p1748_p1 = scmp.ge.s32.totalorder %s2139_s24, 1  ;;  %p599_p2 = scmp.lt.s32.totalorder %s2139_s24, 7 }
  0x73   : > { %p600_p3 = pnand %p1748_p1, %p599_p2 }
  0x74   : > { %s606_s14 = sand.u32 (!%p600_p3), 1, %s2115_s18   ;;  %s2374_s29 = sand.u32 (!%p600_p3), 1, %s2107_s16  }
  0x75   : > { %603 = sbr.rel (%p600_p3) target bundleno = 455 (0x1c7), region = 141  ;;  %s1749_s30 = sshll.u32 (!%p600_p3), %s606_s14, 7 }
  0x76   : > { %s1750_s9 = sshll.u32 (!%p600_p3), %s2374_s29, 5  ;;  %s1751_s6 = sshll.u32 (!%p600_p3), %s606_s14, 8 }
  0x77   : > { %s1752_s8 = sshll.u32 (!%p600_p3), %s2374_s29, 4  ;;  %s1753_s25 = sshll.u32 (!%p600_p3), %s2127_s21, 1 }
  0x78   : > { %p661_p4 = scmp.lt.s32.totalorder (!%p600_p3), %s1753_s25, 3  ;;  %s2385_s0 = scalar_lea.vmem (!%p600_p3), [#allocation3], %s1749_s30 }
  0x79   : > { %s615_s18 = scalar_lea.vmem (!%p600_p3), [#allocation4], %s1750_s9  ;;  %s2387_s1 = scalar_lea.vmem (!%p600_p3), [#allocation5], %s1751_s6 }
  0x7a   : > { %s2660_s25 = smov (!%p661_p4, %s1753_s25), 3  ;;  %s2389_s3 = scalar_lea.vmem [#allocation6], %s1752_s8 }
  0x7b   : > { %s663_s5 = scalar_lea.vmem %s2631_s2, %s2660_s25  ;;  %p1754_p5 = scmp.ne.s32.totalorder %s2123_s20, 0 }
  0x7d   : > { %672 = sbr.rel (%p1754_p5) target bundleno = 133 (0x85), region = 157 }
  0x82   : > { %v2141_v52 = vmov -inf  }
  0x83   : > { %673 = vst [vmem:[#allocation2] sm:$0xff] %v2141_v52 }
  0x84   : > { %674 = vst [vmem:[#allocation2 + $0x8] sm:$0xff] %v2141_v52 }
  0x85 PF: > { %v1829_v53 = vld [vmem:[%s615_s18 + $0x10] sm:$0xf]  ;;  %v1927_v54 = vld [vmem:[%s615_s18 + $0x14] sm:$0xf0]  ;;  %v1926_v55 = vld [vmem:[%s615_s18 + $0x14] sm:$0xf] }
  0x86   : > { %v1830_v56 = vor.u32 %v1927_v54, %v1829_v53  ;;  %v1831_v57 = vld [vmem:[%s615_s18 + $0x18] sm:$0xf0]  ;;  %v1040_v58 = vld [vmem:[%s2387_s1 + $0x10] sm:$0xff]  ;;  %v1038_v59 = vld [vmem:[%s2387_s1] sm:$0xff]  ;;  %v2142_v61 = vmov 0   ;;  %vm811_vm0 = vcmask 261120  }
  0x87   : > { %v1834_v60 = vor.u32 %v1926_v55, %v1831_v57  ;;  %2023 = vset.pattern.permute.xlu1 %v2142_v61  ;;  %2022 = vset.pattern.permute.xlu0 %v2142_v61  ;;  %v1869_v62 = vadd.f32 -1.0, %v1040_v58  ;;  %v1867_v63 = vadd.f32 -1.0, %v1038_v59  ;;  %v1821_v0 = vld [vmem:[%s615_s18] sm:$0xf]  ;;  %v1925_v1 = vld [vmem:[%s615_s18 + $0x4] sm:$0xf0] }
  0x88   : > { %866 = vmatpush.bf16.msra.mxu0 %v1830_v56  ;;  %1929 = vmatpush.bf16.msra.mxu2 %v1830_v56  ;;  %v1822_v2 = vor.u32 %v1925_v1, %v1821_v0  ;;  %v1924_v3 = vld [vmem:[%s615_s18 + $0x4] sm:$0xf]  ;;  %v1823_v4 = vld [vmem:[%s615_s18 + $0x8] sm:$0xf0]  ;;  %v1041_v8 = vld [vmem:[%s2387_s1 + $0x18] sm:$0xff]  ;;  %vm1520_vm1 = vcmask 1041409  }
  0x89   : > { %955 = vmatpush.bf16.msra.mxu1 %v1834_v60  ;;  %1931 = vmatpush.bf16.msra.mxu3 %v1834_v60  ;;  %v1104_v5 = vmul.f32 1e+30, %v1869_v62  ;;  %v1102_v6 = vmul.f32 1e+30, %v1867_v63  ;;  %v1826_v7 = vor.u32 %v1924_v3, %v1823_v4  ;;  %v1039_v9 = vld [vmem:[%s2387_s1 + $0x8] sm:$0xff]  ;;  %v1042_v10 = vld [vmem:[%s2387_s1 + $0x20] sm:$0xff] }
  0x8a   : > { %2024 = vset.pattern.permute.xlu2 %v2142_v61  ;;  %v1908_v11 = vld [vmem:[%s2385_s0] sm:$0xff]  ;;  %v1870_v13 = vadd.f32 -1.0, %v1041_v8  ;;  %v1868_v14 = vadd.f32 -1.0, %v1039_v9  ;;  %v1871_v15 = vadd.f32 -1.0, %v1042_v10  ;;  %v1043_v17 = vld [vmem:[%s2387_s1 + $0x28] sm:$0xff]  ;;  %v1045_v20 = vld [vmem:[%s2387_s1 + $0x38] sm:$0xff] }
  0x8b   : > { %1146 = vperm.xlu1 %2023, %v1104_v5   ;;  %1136 = vperm.xlu0 %2022, %v1102_v6   ;;  %v1916_v12 = vld [vmem:[%s2385_s0 + $0x40] sm:$0xff]  ;;  %v1044_v21 = vld [vmem:[%s2387_s1 + $0x30] sm:$0xff]  ;;  %v1872_v22 = vadd.f32 -1.0, %v1043_v17  ;;  %v1874_v23 = vadd.f32 -1.0, %v1045_v20  ;;  %v1047_v30 = vld [vmem:[%s2387_s1 + $0x48] sm:$0xff]  ;;  %vm1522_vm2 = vcmask 1042434  }
  0x8c   : > { %867 = vmatpush.bf16.msra.mxu0 %v1822_v2  ;;  %1930 = vmatpush.bf16.msra.mxu2 %v1822_v2  ;;  %v1106_v16 = vmul.f32 1e+30, %v1871_v15  ;;  %v1105_v18 = vmul.f32 1e+30, %v1870_v13  ;;  %v1103_v19 = vmul.f32 1e+30, %v1868_v14 }
  0x8d   : > { %956 = vmatpush.bf16.msra.mxu1 %v1826_v7  ;;  %1932 = vmatpush.bf16.msra.mxu3 %v1826_v7  ;;  %v1873_v24 = vadd.f32 -1.0, %v1044_v21  ;;  %v1107_v25 = vmul.f32 1e+30, %v1872_v22  ;;  %v1046_v26 = vld [vmem:[%s2387_s1 + $0x40] sm:$0xff]  ;;  %v1109_v27 = vmul.f32 1e+30, %v1874_v23 }
  0x8e   : > { %1156 = vperm.xlu2 %2024, %v1106_v16   ;;  %v1048_v29 = vld [vmem:[%s2387_s1 + $0x50] sm:$0xff]  ;;  %v1875_v31 = vadd.f32 -1.0, %v1046_v26  ;;  %v1909_v32 = vld [vmem:[%s2385_s0 + $0x8] sm:$0xff]  ;;  %v1876_v35 = vadd.f32 -1.0, %v1047_v30  ;;  %v1049_v37 = vld [vmem:[%s2387_s1 + $0x58] sm:$0xff]  ;;  %vm1524_vm3 = vcmask 1043459  }
  0x8f   : > { %1835 = vmatmul.msk.bf16.vlgmr.msra.gmra.mxu0 %vm811_vm0, %v1908_v11  ;;  %1843 = vmatmul.msk.bf16.vlgmr.msra.gmra.mxu2 %vm811_vm0, %v1916_v12  ;;  %v1108_v28 = vmul.f32 1e+30, %v1873_v24  ;;  %v1917_v33 = vld [vmem:[%s2385_s0 + $0x48] sm:$0xff]  ;;  %v1877_v34 = vadd.f32 -1.0, %v1048_v29  ;;  %v1050_v41 = vld [vmem:[%s2387_s1 + $0x60] sm:$0xff]  ;;  %v1878_v42 = vadd.f32 -1.0, %v1049_v37 }
  0x90   : > { %1851 = vmatmul.msk.bf16.vlgmr.msra.gmra.mxu1 %vm811_vm0, %v1908_v11  ;;  %1859 = vmatmul.msk.bf16.vlgmr.msra.gmra.mxu3 %vm811_vm0, %v1916_v12  ;;  %v1110_v36 = vmul.f32 1e+30, %v1875_v31  ;;  %v1111_v39 = vmul.f32 1e+30, %v1876_v35  ;;  %v1051_v40 = vld [vmem:[%s2387_s1 + $0x68] sm:$0xff]  ;;  %v1879_v44 = vadd.f32 -1.0, %v1050_v41 }
  0x91   : > { %v1112_v38 = vmul.f32 1e+30, %v1877_v34  ;;  %v1880_v43 = vadd.f32 -1.0, %v1051_v40  ;;  %v1113_v45 = vmul.f32 1e+30, %v1878_v42  ;;  %v1052_v46 = vld [vmem:[%s2387_s1 + $0x70] sm:$0xff] }
  0x92   : > { %v1114_v48 = vmul.f32 1e+30, %v1879_v44  ;;  %v1054_v49 = vld [vmem:[%s2387_s1 + $0x80] sm:$0xff]  ;;  %v1053_v50 = vld [vmem:[%s2387_s1 + $0x78] sm:$0xff]  ;;  %v1881_v51 = vadd.f32 -1.0, %v1052_v46  ;;  %v1910_v52 = vld [vmem:[%s2385_s0 + $0x10] sm:$0xff] }
  0x93   : > { %1151 = vperm.xlu1 %2023, %v1105_v18   ;;  %1141 = vperm.xlu0 %2022, %v1103_v19   ;;  %v1115_v47 = vmul.f32 1e+30, %v1880_v43  ;;  %v1918_v53 = vld [vmem:[%s2385_s0 + $0x50] sm:$0xff]  ;;  %v1883_v54 = vadd.f32 -1.0, %v1054_v49  ;;  %v1882_v55 = vadd.f32 -1.0, %v1053_v50  ;;  %v1055_v57 = vld [vmem:[%s2387_s1 + $0x88] sm:$0xff] }
  0x94   : > { %v1116_v56 = vmul.f32 1e+30, %v1881_v51  ;;  %v1057_v60 = vld [vmem:[%s2387_s1 + $0x98] sm:$0xff]  ;;  %v1056_v61 = vld [vmem:[%s2387_s1 + $0x90] sm:$0xff]  ;;  %v1884_v62 = vadd.f32 -1.0, %v1055_v57  ;;  %v1058_v2 = vld [vmem:[%s2387_s1 + $0xa0] sm:$0xff] }
  0x95   : > { %v1118_v58 = vmul.f32 1e+30, %v1883_v54  ;;  %v1117_v59 = vmul.f32 1e+30, %v1882_v55  ;;  %v1886_v63 = vadd.f32 -1.0, %v1057_v60  ;;  %v1885_v0 = vadd.f32 -1.0, %v1056_v61 }
  0x96   : > { %1161 = vperm.xlu2 %2024, %v1107_v25   ;;  %v1119_v1 = vmul.f32 1e+30, %v1884_v62  ;;  %v1062_v5 = vld [vmem:[%s2387_s1 + $0xc0] sm:$0xff]  ;;  %v1059_v6 = vld [vmem:[%s2387_s1 + $0xa8] sm:$0xff]  ;;  %v1887_v7 = vadd.f32 -1.0, %v1058_v2  ;;  %v1911_v8 = vld [vmem:[%s2385_s0 + $0x18] sm:$0xff] }
  0x97   : > { %v1121_v3 = vmul.f32 1e+30, %v1886_v63  ;;  %v1120_v4 = vmul.f32 1e+30, %v1885_v0  ;;  %v1919_v9 = vld [vmem:[%s2385_s0 + $0x58] sm:$0xff]  ;;  %v1891_v10 = vadd.f32 -1.0, %v1062_v5 }
  0x98   : > { %v1888_v11 = vadd.f32 -1.0, %v1059_v6  ;;  %v1122_v12 = vmul.f32 1e+30, %v1887_v7  ;;  %v1063_v13 = vld [vmem:[%s2387_s1 + $0xc8] sm:$0xff]  ;;  %v1066_v16 = vld [vmem:[%s2387_s1 + $0xe0] sm:$0xff]  ;;  %v1060_v17 = vld [vmem:[%s2387_s1 + $0xb0] sm:$0xff] }
  0x99   : > { %v1126_v14 = vmul.f32 1e+30, %v1891_v10  ;;  %v1892_v18 = vadd.f32 -1.0, %v1063_v13  ;;  %v1895_v19 = vadd.f32 -1.0, %v1066_v16  ;;  %v1889_v20 = vadd.f32 -1.0, %v1060_v17  ;;  %v1067_v22 = vld [vmem:[%s2387_s1 + $0xe8] sm:$0xff] }
  0x9a   : > { %v1123_v15 = vmul.f32 1e+30, %v1888_v11  ;;  %v1061_v25 = vld [vmem:[%s2387_s1 + $0xb8] sm:$0xff]  ;;  %v1064_v26 = vld [vmem:[%s2387_s1 + $0xd0] sm:$0xff]  ;;  %v1920_v29 = vld [vmem:[%s2385_s0 + $0x60] sm:$0xff]  ;;  %vm1526_vm4 = vcmask 1044484  }
  0x9b   : > { %1171 = vperm.xlu1 %2023, %v1109_v27   ;;  %1166 = vperm.xlu0 %2022, %v1108_v28   ;;  %v1127_v21 = vmul.f32 1e+30, %v1892_v18  ;;  %v1130_v23 = vmul.f32 1e+30, %v1895_v19  ;;  %v1124_v24 = vmul.f32 1e+30, %v1889_v20 }
  0x9c   : > { %v1896_v27 = vadd.f32 -1.0, %v1067_v22  ;;  %v1912_v28 = vld [vmem:[%s2385_s0 + $0x20] sm:$0xff]  ;;  %v1890_v30 = vadd.f32 -1.0, %v1061_v25  ;;  %v1893_v31 = vadd.f32 -1.0, %v1064_v26  ;;  %v1065_v37 = vld [vmem:[%s2387_s1 + $0xd8] sm:$0xff]  ;;  %v1913_v44 = vld [vmem:[%s2385_s0 + $0x28] sm:$0xff] }
  0x9d   : > { %v1894_v40 = vadd.f32 -1.0, %v1065_v37  ;;  %v1914_v46 = vld [vmem:[%s2385_s0 + $0x30] sm:$0xff]  ;;  %v1915_v50 = vld [vmem:[%s2385_s0 + $0x38] sm:$0xff]  ;;  %vm1528_vm5 = vcmask 1045509   ;;  %vm1530_vm6 = vcmask 1046534   ;;  %vm1532_vm7 = vcmask 1047559  }
  0x9e   : > { %1176 = vperm.xlu2 %2024, %v1110_v36   ;;  %v1125_v34 = vmul.f32 1e+30, %v1890_v30  ;;  %v1128_v35 = vmul.f32 1e+30, %v1893_v31  ;;  %v1069_v36 = vld [vmem:[%s2387_s1 + $0xf8] sm:$0xff]  ;;  %p1899_p6 = scmp.ne.s32.totalorder %s2123_s20, 2 }
  0x9f   : > { %1836 = vmatmul.msk.bf16.gmra.mxu0 %vm811_vm0, %v1909_v32  ;;  %1844 = vmatmul.msk.bf16.gmra.mxu2 %vm811_vm0, %v1917_v33  ;;  %v1129_v43 = vmul.f32 1e+30, %v1894_v40  ;;  %v1923_v51 = vld [vmem:[%s2385_s0 + $0x78] sm:$0xff] }
  0xa0   : > { %1852 = vmatmul.msk.bf16.gmra.mxu1 %vm811_vm0, %v1909_v32  ;;  %1860 = vmatmul.msk.bf16.gmra.mxu3 %vm811_vm0, %v1917_v33  ;;  %v1131_v32 = vmul.f32 1e+30, %v1896_v27  ;;  %v1068_v33 = vld [vmem:[%s2387_s1 + $0xf0] sm:$0xff] }
  0xa3   : > { %1186 = vperm.xlu1 %2023, %v1112_v38   ;;  %1181 = vperm.xlu0 %2022, %v1111_v39   ;;  %v1897_v38 = vadd.f32 -1.0, %v1068_v33  ;;  %v1898_v39 = vadd.f32 -1.0, %v1069_v36 }
  0xa5   : > { %v1132_v41 = vmul.f32 1e+30, %v1897_v38  ;;  %v1133_v42 = vmul.f32 1e+30, %v1898_v39 }
  0xa6   : > { %1191 = vperm.xlu2 %2024, %v1113_v45   ;;  %v1921_v45 = vld [vmem:[%s2385_s0 + $0x68] sm:$0xff] }
  0xab   : > { %1201 = vperm.xlu1 %2023, %v1115_v47   ;;  %1196 = vperm.xlu0 %2022, %v1114_v48   ;;  %v1922_v47 = vld [vmem:[%s2385_s0 + $0x70] sm:$0xff] }
  0xae   : > { %1206 = vperm.xlu2 %2024, %v1116_v56  }
  0xaf   : > { %1837 = vmatmul.msk.bf16.gmra.mxu0 %vm811_vm0, %v1910_v52  ;;  %1845 = vmatmul.msk.bf16.gmra.mxu2 %vm811_vm0, %v1918_v53 }
  0xb0   : > { %1853 = vmatmul.msk.bf16.gmra.mxu1 %vm811_vm0, %v1910_v52  ;;  %1861 = vmatmul.msk.bf16.gmra.mxu3 %vm811_vm0, %v1918_v53 }
  0xb3   : > { %1216 = vperm.xlu1 %2023, %v1118_v58   ;;  %1211 = vperm.xlu0 %2022, %v1117_v59  }
  0xb6   : > { %1221 = vperm.xlu2 %2024, %v1119_v1  }
  0xbb   : > { %1231 = vperm.xlu1 %2023, %v1121_v3   ;;  %1226 = vperm.xlu0 %2022, %v1120_v4  }
  0xbe   : > { %1236 = vperm.xlu2 %2024, %v1122_v12  }
  0xbf   : > { %1838 = vmatmul.msk.bf16.gmra.mxu0 %vm811_vm0, %v1911_v8  ;;  %1846 = vmatmul.msk.bf16.gmra.mxu2 %vm811_vm0, %v1919_v9 }
  0xc0   : > { %1854 = vmatmul.msk.bf16.gmra.mxu1 %vm811_vm0, %v1911_v8  ;;  %1862 = vmatmul.msk.bf16.gmra.mxu3 %vm811_vm0, %v1919_v9 }
  0xc3   : > { %1256 = vperm.xlu1 %2023, %v1126_v14   ;;  %1241 = vperm.xlu0 %2022, %v1123_v15  }
  0xc6   : > { %1261 = vperm.xlu2 %2024, %v1127_v21  }
  0xcb   : > { %1276 = vperm.xlu1 %2023, %v1130_v23   ;;  %1246 = vperm.xlu0 %2022, %v1124_v24  }
  0xce   : > { %1281 = vperm.xlu2 %2024, %v1131_v32  }
  0xcf   : > { %1839 = vmatmul.msk.bf16.gmra.mxu0 %vm811_vm0, %v1912_v28  ;;  %1847 = vmatmul.msk.bf16.gmra.mxu2 %vm811_vm0, %v1920_v29 }
  0xd0   : > { %1855 = vmatmul.msk.bf16.gmra.mxu1 %vm811_vm0, %v1912_v28  ;;  %1863 = vmatmul.msk.bf16.gmra.mxu3 %vm811_vm0, %v1920_v29 }
  0xd3   : > { %1251 = vperm.xlu1 %2023, %v1125_v34   ;;  %1266 = vperm.xlu0 %2022, %v1128_v35  }
  0xd6   : > { %1286 = vperm.xlu2 %2024, %v1132_v41  }
  0xdb   : > { %1291 = vperm.xlu1 %2023, %v1133_v42   ;;  %1271 = vperm.xlu0 %2022, %v1129_v43  }
  0xdf   : > { %1840 = vmatmul.msk.bf16.gmra.mxu0 %vm811_vm0, %v1913_v44  ;;  %1848 = vmatmul.msk.bf16.gmra.mxu2 %vm811_vm0, %v1921_v45 }
  0xe0   : > { %1856 = vmatmul.msk.bf16.gmra.mxu1 %vm811_vm0, %v1913_v44  ;;  %1864 = vmatmul.msk.bf16.gmra.mxu3 %vm811_vm0, %v1921_v45 }
  0xe8   : > { %v2466_v48 = vpop.permute.xlu2 %1156 }
  0xef   : > { %1841 = vmatmul.msk.bf16.gmra.mxu0 %vm811_vm0, %v1914_v46  ;;  %1849 = vmatmul.msk.bf16.gmra.mxu2 %vm811_vm0, %v1922_v47 }
  0xf0   : > { %1857 = vmatmul.msk.bf16.gmra.mxu1 %vm811_vm0, %v1914_v46  ;;  %1865 = vmatmul.msk.bf16.gmra.mxu3 %vm811_vm0, %v1922_v47  ;;  %v2468_v49 = vpop.permute.xlu2 %1161 }
  0xf8   : > { %v2476_v54 = vpop.permute.xlu2 %1176 }
  0xfd   : > { %v1147_v52 = vpop.permute.xlu1 %1146  ;;  %v1137_v53 = vpop.permute.xlu0 %1136 }
  0xff   : > { %1842 = vmatmul.msk.bf16.gmra.mxu0 %vm811_vm0, %v1915_v50  ;;  %1850 = vmatmul.msk.bf16.gmra.mxu2 %vm811_vm0, %v1923_v51 }
 0x100   : > { %1858 = vmatmul.msk.bf16.gmra.mxu1 %vm811_vm0, %v1915_v50  ;;  %1866 = vmatmul.msk.bf16.gmra.mxu3 %vm811_vm0, %v1923_v51  ;;  %v2482_v62 = vpop.permute.xlu2 %1191 }
 0x105   : > { %v1152_v55 = vpop.permute.xlu1 %1151  ;;  %v1142_v56 = vpop.permute.xlu0 %1141 }
 0x108   : > { %v2488_v9 = vpop.permute.xlu2 %1206 }
 0x10c   : > { %v869_v57 = vpop.f32.mrf.mxu0 }
 0x10d   : > { %v2478_v58 = vpop.permute.xlu1 %1171  ;;  %v2480_v59 = vpop.permute.xlu0 %1166  ;;  %v1294_v60 = vadd.f32 %v1137_v53, %v869_v57 }
 0x10e   : > { %v958_v61 = vpop.f32.mrf.mxu1 }
 0x10f   : > { %v1295_v63 = vadd.f32 %v1137_v53, %v958_v61 }
 0x110   : > { %v1222_v22 = vpop.permute.xlu2 %1221 }
 0x112   : > { %v909_v0 = vpop.f32.mrf.mxu2 }
 0x113   : > { %v998_v1 = vpop.f32.mrf.mxu3 }
 0x114   : > { %v871_v2 = vpop.f32.mrf.mxu0 }
 0x115   : > { %v2484_v3 = vpop.permute.xlu1 %1186  ;;  %v2486_v4 = vpop.permute.xlu0 %1181  ;;  %v1296_v5 = vadd.f32 %v1142_v56, %v871_v2 }
 0x116   : > { %v960_v6 = vpop.f32.mrf.mxu1 }
 0x117   : > { %v1360_v7 = vmax.f32 %v1294_v60, %v1296_v5  ;;  %v1297_v8 = vadd.f32 %v1142_v56, %v960_v6 }
 0x119   : > { %v1369_v10 = vmax.f32 %v1295_v63, %v1297_v8 }
 0x11a   : > { %v911_v11 = vpop.f32.mrf.mxu2 }
 0x11b   : > { %v1000_v12 = vpop.f32.mrf.mxu3  ;;  %v1328_v28 = vadd.f32 %v1222_v22, %v911_v11 }
 0x11c   : > { %v874_v13 = vpop.f32.mrf.mxu0  ;;  %v1329_v29 = vadd.f32 %v1222_v22, %v1000_v12 }
 0x11d   : > { %v2490_v14 = vpop.permute.xlu1 %1201  ;;  %v2492_v15 = vpop.permute.xlu0 %1196  ;;  %v1298_v16 = vadd.f32 %v1147_v52, %v874_v13 }
 0x11e   : > { %v963_v17 = vpop.f32.mrf.mxu1 }
 0x11f   : > { %v1361_v18 = vmax.f32 %v1360_v7, %v1298_v16  ;;  %v1299_v19 = vadd.f32 %v1147_v52, %v963_v17 }
 0x121   : > { %v1370_v20 = vmax.f32 %v1369_v10, %v1299_v19 }
 0x122   : > { %v914_v21 = vpop.f32.mrf.mxu2 }
 0x123   : > { %v1003_v23 = vpop.f32.mrf.mxu3 }
 0x124   : > { %v876_v24 = vpop.f32.mrf.mxu0 }
 0x125   : > { %v1217_v25 = vpop.permute.xlu1 %1216  ;;  %v2494_v26 = vpop.permute.xlu0 %1211  ;;  %v1300_v27 = vadd.f32 %v1152_v55, %v876_v24 }
 0x126   : > { %v1326_v30 = vadd.f32 %v1217_v25, %v909_v0  ;;  %v1327_v31 = vadd.f32 %v1217_v25, %v998_v1  ;;  %v965_v32 = vpop.f32.mrf.mxu1 }
 0x127   : > { %v1362_v33 = vmax.f32 %v1361_v18, %v1300_v27  ;;  %v1301_v34 = vadd.f32 %v1152_v55, %v965_v32 }
 0x128   : > { %v1432_v35 = vmax.f32 %v1326_v30, %v1328_v28  ;;  %v1441_v36 = vmax.f32 %v1327_v31, %v1329_v29 }
 0x129   : > { %v1371_v37 = vmax.f32 %v1370_v20, %v1301_v34 }
 0x12a   : > { %v916_v38 = vpop.f32.mrf.mxu2 }
 0x12b   : > { %v1005_v39 = vpop.f32.mrf.mxu3 }
 0x12c   : > { %v879_v40 = vpop.f32.mrf.mxu0 }
 0x12d   : > { %v1232_v41 = vpop.permute.xlu1 %1231  ;;  %v1227_v42 = vpop.permute.xlu0 %1226  ;;  %v1302_v43 = vadd.f32 %v2466_v48, %v879_v40 }
 0x12e   : > { %v1330_v44 = vadd.f32 %v1227_v42, %v914_v21  ;;  %v1331_v45 = vadd.f32 %v1227_v42, %v1003_v23  ;;  %v968_v46 = vpop.f32.mrf.mxu1  ;;  %v1332_v50 = vadd.f32 %v1232_v41, %v916_v38  ;;  %v1333_v51 = vadd.f32 %v1232_v41, %v1005_v39 }
 0x12f   : > { %v1303_v47 = vadd.f32 %v2466_v48, %v968_v46  ;;  %v1237_v48 = vpop.permute.xlu2 %1236  ;;  %v1363_v21 = vrot.slane %v1362_v33, 4 }
 0x130   : > { %v1433_v52 = vmax.f32 %v1432_v35, %v1330_v44  ;;  %v1442_v53 = vmax.f32 %v1441_v36, %v1331_v45 }
 0x131   : > { %v1364_v28 = vmax.f32 %v1362_v33, %v1363_v21 }
 0x132   : > { %v2498_v55 = vmax.f32 %v1433_v52, %v1332_v50  ;;  %v2500_v56 = vmax.f32 %v1442_v53, %v1333_v51  ;;  %v919_v57 = vpop.f32.mrf.mxu2 }
 0x133   : > { %v1008_v60 = vpop.f32.mrf.mxu3  ;;  %v1334_v8 = vadd.f32 %v1237_v48, %v919_v57  ;;  %v1365_v40 = vrot.slane %v1364_v28, 2 }
 0x134   : > { %v881_v61 = vpop.f32.mrf.mxu0  ;;  %v1335_v12 = vadd.f32 %v1237_v48, %v1008_v60 }
 0x135   : > { %v1304_v63 = vadd.f32 %v2468_v49, %v881_v61  ;;  %v1242_v5 = vpop.permute.xlu0 %1241  ;;  %v1366_v45 = vmax.f32 %v1364_v28, %v1365_v40 }
 0x136   : > { %v970_v0 = vpop.f32.mrf.mxu1 }
 0x137   : > { %v1378_v1 = vmax.f32 %v1302_v43, %v1304_v63  ;;  %v1305_v2 = vadd.f32 %v2468_v49, %v970_v0  ;;  %v1372_v49 = vrot.slane %v1371_v37, 4  ;;  %v1367_v60 = vrot.slane %v1366_v45, 1 }
 0x139   : > { %v1387_v6 = vmax.f32 %v1303_v47, %v1305_v2  ;;  %v1373_v34 = vmax.f32 %v1371_v37, %v1372_v49 }
 0x13a   : > { %v921_v7 = vpop.f32.mrf.mxu2 }
 0x13b   : > { %v1336_v10 = vadd.f32 %v1242_v5, %v921_v7  ;;  %v1010_v11 = vpop.f32.mrf.mxu3  ;;  %v1374_v42 = vrot.slane %v1373_v34, 2 }
 0x13c   : > { %v1337_v13 = vadd.f32 %v1242_v5, %v1010_v11  ;;  %v884_v16 = vpop.f32.mrf.mxu0  ;;  %v1368_v5 = vmax.f32 %v1366_v45, %v1367_v60 }
 0x13d   : > { %v1450_v17 = vmax.f32 %v1334_v8, %v1336_v10  ;;  %v1306_v18 = vadd.f32 %v2480_v59, %v884_v16  ;;  %v1247_v25 = vpop.permute.xlu0 %1246  ;;  %v1375_v51 = vmax.f32 %v1373_v34, %v1374_v42  ;;  %v1444_v34 = vrot.slane %v2500_v56, 4 }
 0x13e   : > { %v1459_v19 = vmax.f32 %v1335_v12, %v1337_v13  ;;  %v973_v20 = vpop.f32.mrf.mxu1 }
 0x13f   : > { %v1379_v22 = vmax.f32 %v1378_v1, %v1306_v18  ;;  %v1307_v23 = vadd.f32 %v2480_v59, %v973_v20  ;;  %v1376_v0 = vrot.slane %v1375_v51, 1  ;;  %v1257_v20 = vpop.permute.xlu1 %1256 }
 0x141   : > { %v1388_v24 = vmax.f32 %v1387_v6, %v1307_v23  ;;  %v1377_v10 = vmax.f32 %v1375_v51, %v1376_v0 }
 0x142   : > { %v924_v27 = vpop.f32.mrf.mxu2 }
 0x143   : > { %v1338_v29 = vadd.f32 %v1247_v25, %v924_v27  ;;  %v1013_v30 = vpop.f32.mrf.mxu3 }
 0x144   : > { %v1339_v31 = vadd.f32 %v1247_v25, %v1013_v30  ;;  %v886_v32 = vpop.f32.mrf.mxu0 }
 0x145   : > { %v2506_v35 = vmax.f32 %v1450_v17, %v1338_v29  ;;  %v1308_v36 = vadd.f32 %v2478_v58, %v886_v32 }
 0x146   : > { %v2509_v38 = vmax.f32 %v1459_v19, %v1339_v31  ;;  %v975_v39 = vpop.f32.mrf.mxu1  ;;  %v1435_v31 = vrot.slane %v2498_v55, 4 }
 0x147   : > { %v1380_v41 = vmax.f32 %v1379_v22, %v1308_v36  ;;  %v1309_v59 = vadd.f32 %v2478_v58, %v975_v39  ;;  %v2516_v25 = vpop.permute.xlu1 %1276  ;;  %v1262_v36 = vpop.permute.xlu2 %1261 }
 0x148   : > { %v1267_v39 = vpop.permute.xlu0 %1266 }
 0x149   : > { %v1381_v43 = vrot.slane %v1380_v41, 4  ;;  %v1389_v44 = vmax.f32 %v1388_v24, %v1309_v59 }
 0x14a   : > { %v926_v33 = vpop.f32.mrf.mxu2 }
 0x14b   : > { %v1382_v46 = vmax.f32 %v1380_v41, %v1381_v43  ;;  %v1390_v47 = vrot.slane %v1389_v44, 4  ;;  %v1015_v50 = vpop.f32.mrf.mxu3 }
 0x14c   : > { %v889_v37 = vpop.f32.mrf.mxu0 }
 0x14d   : > { %v1383_v52 = vrot.slane %v1382_v46, 2  ;;  %v1391_v53 = vmax.f32 %v1389_v44, %v1390_v47  ;;  %v1310_v41 = vadd.f32 %v2476_v54, %v889_v37  ;;  %v1436_v44 = vmax.f32 %v2498_v55, %v1435_v31 }
 0x14e   : > { %v978_v57 = vpop.f32.mrf.mxu1  ;;  %v1445_v37 = vmax.f32 %v2500_v56, %v1444_v34 }
 0x14f   : > { %v1384_v61 = vmax.f32 %v1382_v46, %v1383_v52  ;;  %v1392_v63 = vrot.slane %v1391_v53, 2  ;;  %v1252_v40 = vpop.permute.xlu1 %1251  ;;  %v1311_v47 = vadd.f32 %v2476_v54, %v978_v57  ;;  %v1437_v55 = vrot.slane %v1436_v44, 2 }
 0x150   : > { %v1340_v45 = vadd.f32 %v1252_v40, %v926_v33 }
 0x151   : > { %v1385_v1 = vrot.slane %v1384_v61, 1  ;;  %v1393_v2 = vmax.f32 %v1391_v53, %v1392_v63 }
 0x152   : > { %v929_v58 = vpop.f32.mrf.mxu2  ;;  %v1452_v33 = vmax.f32 %v2506_v35, %v1340_v45 }
 0x153   : > { %v1386_v6 = vmax.f32 %v1384_v61, %v1385_v1  ;;  %v1394_v48 = vrot.slane %v1393_v2, 1  ;;  %v1018_v7 = vpop.f32.mrf.mxu3 }
 0x154   : > { %v891_v8 = vpop.f32.mrf.mxu0 }
 0x155   : > { %v2512_v11 = vsel %vm1520_vm1, %v1386_v6, %v1368_v5  ;;  %v1395_v12 = vmax.f32 %v1393_v2, %v1394_v48  ;;  %v1312_v32 = vadd.f32 %v2486_v4, %v891_v8  ;;  %v1446_v6 = vrot.slane %v1445_v37, 2 }
 0x156   : > { %v980_v13 = vpop.f32.mrf.mxu1  ;;  %v1342_v48 = vadd.f32 %v1257_v20, %v929_v58  ;;  %v1343_v8 = vadd.f32 %v1257_v20, %v1018_v7 }
 0x157   : > { %v2514_v16 = vsel %vm1520_vm1, %v1395_v12, %v1377_v10  ;;  %v1313_v59 = vadd.f32 %v2486_v4, %v980_v13  ;;  %v1396_v51 = vmax.f32 %v1310_v41, %v1312_v32  ;;  %v1341_v4 = vadd.f32 %v1252_v40, %v1015_v50 }
 0x158   : > { %v1438_v13 = vmax.f32 %v1436_v44, %v1437_v55  ;;  %v2540_v34 = vmax.f32 %v1445_v37, %v1446_v6 }
 0x159   : > { %v1405_v61 = vmax.f32 %v1311_v47, %v1313_v59 }
 0x15a   : > { %v931_v17 = vpop.f32.mrf.mxu2  ;;  %v1448_v44 = vrot.slane %v2540_v34, 1 }
 0x15b   : > { %v1020_v18 = vpop.f32.mrf.mxu3  ;;  %v1344_v2 = vadd.f32 %v1262_v36, %v931_v17 }
 0x15c   : > { %v894_v19 = vpop.f32.mrf.mxu0  ;;  %v1345_v5 = vadd.f32 %v1262_v36, %v1020_v18 }
 0x15d   : > { %v1314_v42 = vadd.f32 %v2484_v3, %v894_v19  ;;  %v1453_v19 = vrot.slane %v1452_v33, 4 }
 0x15e   : > { %v983_v21 = vpop.f32.mrf.mxu1  ;;  %v1477_v35 = vmax.f32 %v1343_v8, %v1345_v5 }
 0x15f   : > { %v1315_v52 = vadd.f32 %v2484_v3, %v983_v21  ;;  %v1397_v63 = vmax.f32 %v1396_v51, %v1314_v42  ;;  %v1461_v3 = vmax.f32 %v2509_v38, %v1341_v4  ;;  %v1468_v21 = vmax.f32 %v1342_v48, %v1344_v2 }
 0x161   : > { %v1406_v54 = vmax.f32 %v1405_v61, %v1315_v52  ;;  %v1462_v38 = vrot.slane %v1461_v3, 4 }
 0x162   : > { %v934_v22 = vpop.f32.mrf.mxu2 }
 0x163   : > { %v1023_v23 = vpop.f32.mrf.mxu3  ;;  %v1346_v10 = vadd.f32 %v1267_v39, %v934_v22  ;;  %v1463_v45 = vmax.f32 %v1461_v3, %v1462_v38 }
 0x164   : > { %v896_v49 = vpop.f32.mrf.mxu0  ;;  %v1347_v56 = vadd.f32 %v1267_v39, %v1023_v23  ;;  %v1439_v23 = vrot.slane %v1438_v13, 1  ;;  %v1454_v39 = vmax.f32 %v1452_v33, %v1453_v19 }
 0x165   : > { %v1316_v53 = vadd.f32 %v2482_v62, %v896_v49  ;;  %v1469_v58 = vmax.f32 %v1468_v21, %v1346_v10 }
 0x166   : > { %v985_v24 = vpop.f32.mrf.mxu1  ;;  %v1478_v7 = vmax.f32 %v1477_v35, %v1347_v56  ;;  %v2548_v52 = vmax.f32 %v1438_v13, %v1439_v23  ;;  %v1455_v61 = vrot.slane %v1454_v39, 2 }
 0x167   : > { %v1317_v0 = vadd.f32 %v2482_v62, %v985_v24  ;;  %v1398_v57 = vmax.f32 %v1397_v63, %v1316_v53  ;;  %v1272_v62 = vpop.permute.xlu0 %1271  ;;  %v1282_v24 = vpop.permute.xlu2 %1281 }
 0x168   : > { %v1456_v35 = vmax.f32 %v1454_v39, %v1455_v61  ;;  %v1449_v39 = vmax.f32 %v2540_v34, %v1448_v44 }
 0x169   : > { %v1407_v50 = vmax.f32 %v1406_v54, %v1317_v0  ;;  %v1399_v17 = vrot.slane %v1398_v57, 4  ;;  %v1464_v54 = vrot.slane %v1463_v45, 2 }
 0x16a   : > { %v936_v27 = vpop.f32.mrf.mxu2 }
 0x16b   : > { %v1025_v28 = vpop.f32.mrf.mxu3  ;;  %v1348_v18 = vadd.f32 %v1272_v62, %v936_v27  ;;  %v1408_v20 = vrot.slane %v1407_v50, 4  ;;  %v1400_v40 = vmax.f32 %v1398_v57, %v1399_v17  ;;  %v1465_v17 = vmax.f32 %v1463_v45, %v1464_v54 }
 0x16c   : > { %v2518_v29 = vpop.f32.mrf.mxu0  ;;  %v1349_v31 = vadd.f32 %v1272_v62, %v1025_v28 }
 0x16d   : > { %v1470_v41 = vmax.f32 %v1469_v58, %v1348_v18  ;;  %v1318_v42 = vadd.f32 %v2492_v15, %v2518_v29  ;;  %v1409_v47 = vmax.f32 %v1407_v50, %v1408_v20  ;;  %v1401_v29 = vrot.slane %v1400_v40, 2 }
 0x16e   : > { %v2520_v30 = vpop.f32.mrf.mxu1  ;;  %v1479_v59 = vmax.f32 %v1478_v7, %v1349_v31 }
 0x16f   : > { %v1319_v53 = vadd.f32 %v2492_v15, %v2520_v30  ;;  %v1471_v63 = vrot.slane %v1470_v41, 4  ;;  %v1287_v5 = vpop.permute.xlu2 %1286  ;;  %v1410_v57 = vrot.slane %v1409_v47, 2  ;;  %v1402_v10 = vmax.f32 %v1400_v40, %v1401_v29 }
 0x171   : > { %v1472_v56 = vmax.f32 %v1470_v41, %v1471_v63  ;;  %v1403_v7 = vrot.slane %v1402_v10, 1  ;;  %v1457_v41 = vrot.slane %v1456_v35, 1 }
 0x172   : > { %v2528_v43 = vpop.f32.mrf.mxu2 }
 0x173   : > { %v2531_v46 = vpop.f32.mrf.mxu3  ;;  %v1350_v15 = vadd.f32 %v2516_v25, %v2528_v43  ;;  %v1292_v43 = vpop.permute.xlu1 %1291  ;;  %v1473_v20 = vrot.slane %v1472_v56, 2  ;;  %v1458_v63 = vmax.f32 %v1456_v35, %v1457_v41 }
 0x174   : > { %v901_v60 = vpop.f32.mrf.mxu0  ;;  %v1351_v50 = vadd.f32 %v2516_v25, %v2531_v46 }
 0x175   : > { %v1320_v36 = vadd.f32 %v2490_v14, %v901_v60 }
 0x176   : > { %v990_v1 = vpop.f32.mrf.mxu1 }
 0x177   : > { %v1321_v27 = vadd.f32 %v2490_v14, %v990_v1  ;;  %v1414_v60 = vmax.f32 %v1318_v42, %v1320_v36  ;;  %v1480_v14 = vrot.slane %v1479_v59, 4 }
 0x179   : > { %v1423_v1 = vmax.f32 %v1319_v53, %v1321_v27  ;;  %v1481_v13 = vmax.f32 %v1479_v59, %v1480_v14  ;;  %v1474_v53 = vmax.f32 %v1472_v56, %v1473_v20 }
 0x17a   : > { %v941_v12 = vpop.f32.mrf.mxu2 }
 0x17b   : > { %v1030_v49 = vpop.f32.mrf.mxu3  ;;  %v1352_v55 = vadd.f32 %v1282_v24, %v941_v12  ;;  %v1482_v46 = vrot.slane %v1481_v13, 2 }
 0x17c   : > { %v904_v32 = vpop.f32.mrf.mxu0  ;;  %v1353_v30 = vadd.f32 %v1282_v24, %v1030_v49  ;;  %v1411_v49 = vmax.f32 %v1409_v47, %v1410_v57  ;;  %v1466_v47 = vrot.slane %v1465_v17, 1 }
 0x17d   : > { %v1322_v28 = vadd.f32 %v2488_v9, %v904_v32  ;;  %v1486_v19 = vmax.f32 %v1350_v15, %v1352_v55 }
 0x17e   : > { %v993_v22 = vpop.f32.mrf.mxu1  ;;  %v1495_v24 = vmax.f32 %v1351_v50, %v1353_v30  ;;  %v1412_v59 = vrot.slane %v1411_v49, 1  ;;  %v1467_v30 = vmax.f32 %v1465_v17, %v1466_v47 }
 0x17f   : > { %v1323_v37 = vadd.f32 %v2488_v9, %v993_v22  ;;  %v1415_v33 = vmax.f32 %v1414_v60, %v1322_v28 }
 0x180   : > { %v1413_v14 = vmax.f32 %v1411_v49, %v1412_v59 }
 0x181   : > { %v1424_v9 = vmax.f32 %v1423_v1, %v1323_v37  ;;  %v1483_v37 = vmax.f32 %v1481_v13, %v1482_v46  ;;  %v1358_v13 = vld [vmem:[#allocation2] sm:$0xff] }
 0x182   : > { %v944_v51 = vpop.f32.mrf.mxu2 }
 0x183   : > { %v1033_v4 = vpop.f32.mrf.mxu3  ;;  %v1354_v3 = vadd.f32 %v1287_v5, %v944_v51  ;;  %v1404_v51 = vmax.f32 %v1402_v10, %v1403_v7 }
 0x184   : > { %v906_v0 = vpop.f32.mrf.mxu0  ;;  %v1355_v12 = vadd.f32 %v1287_v5, %v1033_v4  ;;  %v1484_v5 = vrot.slane %v1483_v37, 1 }
 0x185   : > { %v1324_v2 = vadd.f32 %v2494_v26, %v906_v0  ;;  %v1487_v31 = vmax.f32 %v1486_v19, %v1354_v3  ;;  %v1523_v55 = vsel %vm1522_vm2, %v1404_v51, %v2512_v11 }
 0x186   : > { %v995_v6 = vpop.f32.mrf.mxu1  ;;  %v1496_v22 = vmax.f32 %v1495_v24, %v1355_v12  ;;  %v1485_v12 = vmax.f32 %v1483_v37, %v1484_v5 }
 0x187   : > { %v1416_v48 = vmax.f32 %v1415_v33, %v1324_v2  ;;  %v1325_v8 = vadd.f32 %v2494_v26, %v995_v6  ;;  %v1475_v33 = vrot.slane %v1474_v53, 1  ;;  %v1535_v6 = vsel %vm1522_vm2, %v1413_v14, %v2514_v16 }
 0x189   : > { %v1417_v62 = vrot.slane %v1416_v48, 4  ;;  %v1425_v21 = vmax.f32 %v1424_v9, %v1325_v8  ;;  %v1476_v10 = vmax.f32 %v1474_v53, %v1475_v33 }
 0x18a   : > { %v946_v18 = vpop.f32.mrf.mxu2 }
 0x18b   : > { %v1418_v32 = vmax.f32 %v1416_v48, %v1417_v62  ;;  %v1426_v38 = vrot.slane %v1425_v21, 4  ;;  %v1356_v26 = vadd.f32 %v1292_v43, %v946_v18  ;;  %v1035_v58 = vpop.f32.mrf.mxu3 }
 0x18c   : > { %v1357_v25 = vadd.f32 %v1292_v43, %v1035_v58 }
 0x18d   : > { %v1419_v23 = vrot.slane %v1418_v32, 2  ;;  %v1427_v36 = vmax.f32 %v1425_v21, %v1426_v38  ;;  %v1488_v40 = vmax.f32 %v1487_v31, %v1356_v26  ;;  %v1359_v21 = vld [vmem:[#allocation2 + $0x8] sm:$0xff] }
 0x18e   : > { %v1497_v42 = vmax.f32 %v1496_v22, %v1357_v25 }
 0x18f   : > { %v1420_v27 = vmax.f32 %v1418_v32, %v1419_v23  ;;  %v1428_v28 = vrot.slane %v1427_v36, 2  ;;  %v1489_v45 = vrot.slane %v1488_v40, 4 }
 0x190   : > { %v1498_v60 = vrot.slane %v1497_v42, 4 }
 0x191   : > { %v1421_v4 = vrot.slane %v1420_v27, 1  ;;  %v1429_v61 = vmax.f32 %v1427_v36, %v1428_v28  ;;  %v1490_v29 = vmax.f32 %v1488_v40, %v1489_v45 }
 0x192   : > { %v1499_v0 = vmax.f32 %v1497_v42, %v1498_v60 }
 0x193   : > { %v1422_v34 = vmax.f32 %v1420_v27, %v1421_v4  ;;  %v1430_v44 = vrot.slane %v1429_v61, 1  ;;  %v1491_v1 = vrot.slane %v1490_v29, 2 }
 0x194   : > { %v1500_v2 = vrot.slane %v1499_v0, 2 }
 0x195   : > { %v1525_v54 = vsel %vm1524_vm3, %v1422_v34, %v1523_v55  ;;  %v1431_v57 = vmax.f32 %v1429_v61, %v1430_v44  ;;  %v1492_v15 = vmax.f32 %v1490_v29, %v1491_v1 }
 0x196   : > { %v1527_v9 = vsel %vm1526_vm4, %v2548_v52, %v1525_v54  ;;  %v1501_v3 = vmax.f32 %v1499_v0, %v1500_v2 }
 0x197   : > { %v1536_v48 = vsel %vm1524_vm3, %v1431_v57, %v1535_v6  ;;  %v1493_v8 = vrot.slane %v1492_v15, 1  ;;  %v1529_v11 = vsel %vm1528_vm5, %v1458_v63, %v1527_v9 }
 0x198   : > { %v1537_v56 = vsel %vm1526_vm4, %v1449_v39, %v1536_v48  ;;  %v1502_v50 = vrot.slane %v1501_v3, 1  ;;  %v1531_v62 = vsel %vm1530_vm6, %v1476_v10, %v1529_v11 }
 0x199   : > { %v1494_v19 = vmax.f32 %v1492_v15, %v1493_v8  ;;  %v1538_v16 = vsel %vm1528_vm5, %v1467_v30, %v1537_v56 }
 0x19a   : > { %v1503_v52 = vmax.f32 %v1501_v3, %v1502_v50  ;;  %v1539_v17 = vsel %vm1530_vm6, %v1485_v12, %v1538_v16 }
 0x19b   : > { %v1533_v35 = vsel %vm1532_vm7, %v1494_v19, %v1531_v62  ;;  %1550 = sbr.rel (%p1899_p6) target bundleno = 440 (0x1b8), region = 161 }
 0x19c   : > { %v1543_v43 = vmax.f32 %v1358_v13, %v1533_v35  ;;  %v1540_v49 = vsel %vm1532_vm7, %v1503_v52, %v1539_v17 }
 0x19d   : > { %v1544_v24 = vmax.f32 %v1359_v21, %v1540_v49 }
 0x19e   : > { %1545 = vst [vmem:[#allocation2] sm:$0xff] %v1543_v43 }
 0x19f   : > { %1546 = vst [vmem:[#allocation2 + $0x8] sm:$0xff] %v1544_v24 }
 0x1a0   : > { %v1553_v31 = vld [vmem:[%s663_s5] sm:$0x3] }
 0x1a1   : > { %v1555_v38 = vperm.slane %v1553_v31, 0  ;;  %v1556_v26 = vperm.slane %v1553_v31, 1 }
 0x1a5   : > { %v1551_v18 = vld [vmem:[#allocation2] sm:$0xff] }
 0x1a6   : > { %v1552_v32 = vld [vmem:[#allocation2 + $0x8] sm:$0xff]  ;;  %v1559_v58 = vadd.f32 %v1555_v38, %v1551_v18 }
 0x1a7   : > { %v1560_v7 = vadd.f32 %v1556_v26, %v1552_v32 }
 0x1a8   : > { %v1561_v20 = vmax.f32 %v1559_v58, 0.0 }
 0x1a9   : > { %v1562_v22 = vmax.f32 %v1560_v7, 0.0 }
 0x1aa   : > { %v1563_v25 = vadd.f32 1.0, %v1561_v20  ;;  %v1566_v46 = vmul.f32 -0.5, %v1561_v20  ;;  %v1569_v39 = vand.u32 2147483647, %v1561_v20 }
 0x1ab   : > { %v1572_v23 = vadd.f32 1.0, %v1562_v22  ;;  %v1575_v36 = vmul.f32 -0.5, %v1562_v22  ;;  %v1578_v59 = vand.u32 2147483647, %v1562_v22 }
 0x1ac   : > { %2025 = vlog2.f32 %v1563_v25  ;;  %v1567_v40 = vadd.f32 1.0, %v1566_v46  ;;  %vm1570_vm8 = vcmp.lt.f32.partialorder %v1569_v39, 0.0004427343 }
 0x1ad   : > { %2027 = vlog2.f32 %v1572_v23  ;;  %v1576_v41 = vadd.f32 1.0, %v1575_v36  ;;  %vm1579_vm9 = vcmp.lt.f32.partialorder %v1578_v59, 0.0004427343 }
 0x1ae   : > { %v1568_v42 = vmul.f32 %v1567_v40, %v1561_v20 }
 0x1af   : > { %v1577_v28 = vmul.f32 %v1576_v41, %v1562_v22 }
 0x1b2   : > { %v2026_v27 = vpop.eup %2025 }
 0x1b3   : > { %v2028_v45 = vpop.eup %2027  ;;  %v1565_v47 = vmul.f32 0.6931472, %v2026_v27 }
 0x1b4   : > { %v1574_v51 = vmul.f32 0.6931472, %v2028_v45 }
 0x1b5   : > { %v1571_v53 = vsel %vm1570_vm8, %v1568_v42, %v1565_v47 }
 0x1b6   : > { %1581 = vst [vmem:[%s2389_s3] sm:$0xff] %v1571_v53  ;;  %v1580_v60 = vsel %vm1579_vm9, %v1577_v28, %v1574_v51 }
 0x1b7   : > { %1582 = vst [vmem:[%s2389_s3 + $0x8] sm:$0xff] %v1580_v60 }
 0x1b8 PF: > { %s1928_s20 = sshll.u32 %s2127_s21, 4  ;;  %s1599_s6 = sshll.u32 %s2389_s3, 4  ;;  %s1600_s6 = int_to_ptr.vmem [resolvable:$true] %s1599_s6 }
 0x1b9   : > { %s1597_s9 = scalar_lea.hbm %s2633_s4, %s1928_s20  ;;  %s1584_s25 = scalar_lea.sflag [#allocation7], %s2374_s29 }
 0x1ba   : > { %s1601_s8 = sshll.u32 %s1597_s9, 4  ;;  %s2049_s21 = scalar_lea.hbm %s2633_s4, 32  ;;  %s1602_s8 = int_to_ptr.hbm [resolvable:$true] %s1601_s8 }
 0x1bb   : > { %s2043_s13 = sshra.s32 %s1602_s8, 4  ;;  %s2044_s13 = int_to_ptr.hbm [resolvable:$true] %s2043_s13 }
 0x1bc   : > { %s2045_s26 = scalar_lea.hbm %s2044_s13, 16  ;;  %p2050_p10 = scmp.lt.s32.totalorder %s2044_s13, %s2633_s4 }
 0x1bd   : > { %p2046_p7 = scmp.ne.s32.totalorder %s2044_s13, %s2045_s26  ;;  %p2051_p11 = scmp.lt.s32.totalorder %s2049_s21, %s2045_s26 }
 0x1bf   : > { %p2047_p8 = pnand %p2046_p7, %p2254_p12  ;;  %p2052_p0 = por %p2051_p11, %p2050_p10 }
 0x1c1   : > { %p2048_p9 = pneg %p2047_p8 }
 0x1c3   : > { %p2053_p1 = pnand %p2052_p0, %p2048_p9 }
 0x1c5   : > { %2056 = shalt.err (!%p2053_p1)
}
 0x1c6   : > { %1933 = dma.vmem_to_hbm [thread:$0]  (%p2254_p12), %s1600_s6, 256, %s1602_s8, %s1584_s25  }
 0x1c7 PF: > { %p1939_p2 = scmp.ge.s32.totalorder %s2139_s24, 2  ;;  %s1613_s3 = sand.u32 1, %s2103_s15  }
 0x1c8   : > { %s1614_s29 = scalar_lea.sflag [#allocation7], %s1613_s3 }
 0x1c9   : > { %p1936_p3 = pnand %p1939_p2, %p2258_p13 }
 0x1cb   : > { %p1937_p4 = pneg %p1936_p3 }
 0x1cd   : > { %2098 = dma.done.wait (%p1937_p4), %s1614_s29, 256  }
 0x1ce   : > { %2100 = vsyncadd (%p1937_p4), %s1614_s29, 4294967040  ;;  %s17_s24 = sadd.s32 1, %s2139_s24   ;;  %s2644_s15 = smov %s2107_s16 }
 0x1cf   : > { %p14_p5 = scmp.ge.s32.totalorder %s17_s24, 8   ;;  %s2645_s16 = smov %s2111_s17 }
 0x1d0   : > { %s2646_s17 = smov %s2252_s10  ;;  %s2647_s18 = smov %s2119_s19 }
 0x1d1   : > { %s2648_s19 = smov %s2241_s7  ;;  %s2649_s20 = smov %s2131_s22 }
 0x1d2   : > { %s2650_s21 = smov %s2135_s23  ;;  %s2651_s22 = smov %s2654_s27 }
 0x1d3   : > { %s2652_s23 = smov %s2658_s28  ;;  %16 = sbr.rel (!%p14_p5) target bundleno = 10 (0xa), region = 220 }
 0x1d8   :  { %1620 = vsyncpa [#allocation7], 1 }
 0x1d9   :  { %1622 = vsyncpa [#allocation7 + $0x1], 1 }

</bundles_post_ra>
